<compile_context>
chip_gen: v7x
topology: tpu7x:2x2x1
jax: 0.10.0
libtpu: 0.0.40
codegen_flags: <defaults>
</compile_context>

<pallas_src>
import functools

import jax
import jax.numpy as jnp
import numpy as np
from jax.experimental import pallas as pl
from jax.experimental.pallas import tpu as pltpu


def _round_up(a, b):
    return (a + b - 1) // b * b


def _device_info():
    """Returns (num_tensorcores_per_chip, physical VMEM bytes per TensorCore)."""
    kind = ""
    try:
        kind = jax.devices()[0].device_kind.lower()
    except Exception:
        pass
    if "v7" in kind or "7x" in kind:
        n_tc, vmem = 2, 64 * 1024 * 1024
    elif any(t in kind for t in ("v5", "v6")):
        n_tc, vmem = 1, 128 * 1024 * 1024
    else:
        n_tc, vmem = 1, 64 * 1024 * 1024          # conservative default for unknown chips
    try:  # authoritative VMEM capacity when the query is available
        vmem = int(pltpu.get_tpu_info().vmem_capacity_bytes)
    except Exception:
        pass
    return n_tc, vmem


def _quantized_linear_kernel(x_ref, qw_ref, s_ref, z_ref, *rest,
                             num_groups, group_size, has_bias):
    if has_bias:
        b_ref, o_ref, w_slab = rest
    else:
        (o_ref, w_slab), b_ref = rest, None

    K, n_blk = w_slab.shape

    # One-time (per core, per N-split) dequant of the (K, n_blk) weight half into the
    # persistent bf16 VMEM slab; every subsequent M tile on this core is pure MXU work.
    @pl.when(pl.program_id(1) == 0)
    def _dequant():
        # TODO(synk): chunked manual DMA (memory_space=pl.ANY + make_async_copy) would
        # overlap the int8 HBM load with this VPU pass and shrink the exposed prologue
        # for decode-sized M; not needed at these layer sizes.
        q = qw_ref[...].astype(jnp.float32)                   # int8 -> f32 (v5e has no bf16 VALU)
        q = q.reshape(num_groups, group_size, n_blk)          # sublane-aligned group split
        s = s_ref[...][:, None, :]                            # (G, 1, n) sublane broadcast
        z = z_ref[...][:, None, :]
        w = (q - z) * s
        w_slab[...] = w.reshape(K, n_blk).astype(w_slab.dtype)
        # TODO(synk): on chips with a bf16 VALU (v6e/v7x) this one-off dequant could run in
        # bf16 to halve the VPU pass; kept in f32 here for accuracy margin.

    # (tm, K) bf16 @ (K, n_blk) bf16 -> f32 accumulate on the MXU; in-kernel activation cast.
    acc = jnp.dot(x_ref[...].astype(jnp.bfloat16), w_slab[...],
                  preferred_element_type=jnp.float32)
    if has_bias:
        acc = acc + b_ref[...]
    o_ref[...] = acc.astype(o_ref.dtype)


def quantized_linear(x, qweight, scales, zeros, bias, *, group_size, tm=256):
    """x: (..., K) float; qweight: (N, K) int8; scales/zeros: (N, num_groups) fp16;
    bias: (N,) or None.  Returns (..., N) in x.dtype."""
    *lead, K = x.shape
    N, K_w = qweight.shape
    assert K == K_w
    num_groups = scales.shape[1]
    # Ragged final group unsupported (static slices would read past K); common configs
    # (group_size 32/64/128, K a multiple of it) satisfy this.
    assert K % group_size == 0 and num_groups * group_size == K
    assert group_size % 8 == 0  # keeps the in-kernel group reshape layout-preserving

    M = int(np.prod(lead)) if lead else 1
    has_bias = bias is not None

    n_tc, vmem_cap = _device_info()
    # On 2-TC chips split output columns across cores (each core dequantizes/holds only its
    # own (K, N/2) half); on 1-TC chips use a single split so the dequant fires exactly once.
    n_splits = n_tc if (n_tc > 1 and N % (128 * n_tc) == 0) else 1
    n_per = N // n_splits

    # ---- one-time layout prep (offline / negligible vs. the matmul) ----
    qw_t = qweight.T                                            # (K, N) int8
    # f32 params in lane-dense 2-D (G, N) layout; the unit sublane axis for the group
    # broadcast is added in-kernel, so these VMEM blocks are not padded 1 -> 8 sublanes.
    s_t = scales.T.astype(jnp.float32)                          # (G, N)
    z_t = zeros.T.astype(jnp.float32)                           # (G, N)

    # Activations stay in their native dtype; bf16 MXU cast happens per tile in the kernel.
    x2 = x.reshape(M, K)
    x_bytes = jnp.dtype(x.dtype).itemsize
    out_bytes = x_bytes

    # ---- M tiling + generation-aware VMEM budget (sublane padding accounted) ----
    tm = max(8, min(tm, _round_up(M, 8)))

    def vmem_needed(tm_):
        return (2 * tm_ * K * x_bytes                          # x tiles (double-buffered)
                + 2 * tm_ * n_per * out_bytes                  # out tiles (double-buffered)
                + K * n_per                                    # int8 weight half (single-buffered)
                + 2 * _round_up(num_groups, 8) * n_per * 4     # scales+zeros (single-buffered)
                + (_round_up(1, 8) * n_per * 4 if has_bias else 0)
                + K * n_per * 2)                               # persistent bf16 slab

    budget = int(vmem_cap * 0.8)                               # ~20% headroom for Mosaic internals
    while vmem_needed(tm) > budget and tm > 8:
        tm = max(8, tm // 2)
    need = vmem_needed(tm)
    assert need <= budget, (
        "dequantized weight slab too large for the weight-resident kernel on this chip; "
        "an N/K-tiled accumulator variant is required for this layer size")
    vmem_limit = int(min(max(int(need * 1.3), 16 * 1024 * 1024), budget))

    m_pad = _round_up(M, tm)
    if m_pad != M:
        x2 = jnp.pad(x2, ((0, m_pad - M), (0, 0)))
    m_tiles = m_pad // tm

    operands = [x2, qw_t, s_t, z_t]
    if has_bias:
        operands.append(bias.astype(jnp.float32).reshape(1, N))

    kernel = functools.partial(_quantized_linear_kernel, num_groups=num_groups,
                               group_size=group_size, has_bias=has_bias)

    def build_and_call(single_buffer_consts):
        pm = dict(pipeline_mode=pl.Buffered(1)) if single_buffer_consts else {}
        in_specs = [
            pl.BlockSpec((tm, K), lambda c, i: (i, 0)),                            # x rows
            pl.BlockSpec((K, n_per), lambda c, i: (0, c), **pm),                   # int8 W^T half
            pl.BlockSpec((num_groups, n_per), lambda c, i: (0, c), **pm),          # scales^T
            pl.BlockSpec((num_groups, n_per), lambda c, i: (0, c), **pm),          # zeros^T
        ]
        if has_bias:
            in_specs.append(pl.BlockSpec((1, n_per), lambda c, i: (0, c), **pm))   # bias
        return pl.pallas_call(
            kernel,
            out_shape=jax.ShapeDtypeStruct((m_pad, N), x.dtype),
            grid_spec=pltpu.PrefetchScalarGridSpec(
                num_scalar_prefetch=0,
                grid=(n_splits, m_tiles),
                in_specs=in_specs,
                out_specs=pl.BlockSpec((tm, n_per), lambda c, i: (i, c)),
                scratch_shapes=[pltpu.VMEM((K, n_per), jnp.bfloat16)],             # dequant slab
            ),
            compiler_params=pltpu.CompilerParams(
                dimension_semantics=("parallel", "arbitrary"),
                vmem_limit_bytes=vmem_limit),
        )(*operands)

    try:
        out = build_and_call(True)
    except Exception:
        # TODO(synk): fallback in case this JAX build rejects Buffered(1) single-buffering;
        # identical semantics, only the grid-invariant operands become double-buffered.
        out = build_and_call(False)

    return out[:M].reshape(*lead, N)


def _reference(x, qweight, scales, zeros, bias, group_size):
    """Pure-JAX f32 reference matching the PyTorch module's forward."""
    sf = jnp.repeat(scales.astype(jnp.float32), group_size, axis=1)
    zf = jnp.repeat(zeros.astype(jnp.float32), group_size, axis=1)
    w = (qweight.astype(jnp.float32) - zf) * sf
    y = jnp.einsum("bsk,nk->bsn", x.astype(jnp.float32), w)
    if bias is not None:
        y = y + bias.astype(jnp.float32)
    return y


if __name__ == "__main__":
    # Small shapes consistent with the module: a linear over a (batch, seq, hidden) stream.
    batch, seq = 2, 8
    in_features, out_features = 64, 128
    w_bit, group_size = 8, 32
    num_groups = (in_features + group_size - 1) // group_size   # = 2

    key = jax.random.PRNGKey(0)
    kx, kq, ks, kz, kb = jax.random.split(key, 5)

    x = jax.random.normal(kx, (batch, seq, in_features), dtype=jnp.float32)

    # Quant codes drawn in [0, 128) so the int8 buffer holds the same value under signed or
    # unsigned interpretation (codes >= 128 wrap identically in this kernel and in the
    # PyTorch module's own int8 buffer, but are ambiguous for a reference test).
    qweight = jax.random.randint(kq, (out_features, in_features), 0, 128,
                                 dtype=jnp.int32).astype(jnp.int8)
    scales = (jax.random.uniform(ks, (out_features, num_groups), dtype=jnp.float32)
              * 0.02 + 0.001).astype(jnp.float16)
    zeros = jnp.round(jax.random.uniform(kz, (out_features, num_groups),
                                         dtype=jnp.float32) * 127.0).astype(jnp.float16)
    bias = jax.random.normal(kb, (out_features,), dtype=jnp.float32)

    # bias present
    y = quantized_linear(x, qweight, scales, zeros, bias, group_size=group_size)
    y = jax.block_until_ready(y)
    y_ref = _reference(x, qweight, scales, zeros, bias, group_size)
    # bf16 MXU operands with f32 accumulation -> compare against the f32 reference with a
    # bf16-appropriate tolerance.
    np.testing.assert_allclose(np.asarray(y), np.asarray(y_ref), rtol=3e-2, atol=3e-1)

    # bias=None path (operand and add dropped at trace time)
    y0 = quantized_linear(x, qweight, scales, zeros, None, group_size=group_size)
    y0 = jax.block_until_ready(y0)
    y0_ref = _reference(x, qweight, scales, zeros, None, group_size)
    np.testing.assert_allclose(np.asarray(y0), np.asarray(y0_ref), rtol=3e-2, atol=3e-1)

    print("KERNEL_OK")
</pallas_src>

<mosaic_0001>
module attributes {stable_mosaic.version = 11 : i64} {
  func.func @_quantized_linear_kernel(%arg0: i32, %arg1: i32, %arg2: memref<16x64xf32, #tpu.memory_space<vmem>>, %arg3: memref<64x128xi8, #tpu.memory_space<vmem>>, %arg4: memref<2x128xf32, #tpu.memory_space<vmem>>, %arg5: memref<2x128xf32, #tpu.memory_space<vmem>>, %arg6: memref<1x128xf32, #tpu.memory_space<vmem>>, %arg7: memref<16x128xf32, #tpu.memory_space<vmem>>, %arg8: memref<64x128xbf16, #tpu.memory_space<vmem>>) attributes {dimension_semantics = [#tpu.dimension_semantics<parallel>, #tpu.dimension_semantics<arbitrary>], iteration_bounds = array<i64: 1, 1>, scalar_prefetch = 0 : i64, scratch_operands = 1 : i64, tpu.core_type = #tpu.core_type<tc>, window_params = [{transform_indices = @transform_0, window_bounds = array<i64: 16, 64>}, {pipeline_mode = #tpu.pipeline_mode<synchronous>, transform_indices = @transform_1, window_bounds = array<i64: 64, 128>}, {pipeline_mode = #tpu.pipeline_mode<synchronous>, transform_indices = @transform_2, window_bounds = array<i64: 2, 128>}, {pipeline_mode = #tpu.pipeline_mode<synchronous>, transform_indices = @transform_3, window_bounds = array<i64: 2, 128>}, {pipeline_mode = #tpu.pipeline_mode<synchronous>, transform_indices = @transform_4, window_bounds = array<i64: 1, 128>}, {transform_indices = @transform_5, window_bounds = array<i64: 16, 128>}]} {
    %c0_i32 = arith.constant 0 : i32
    %0 = arith.cmpi eq, %arg1, %c0_i32 : i32
    %1 = arith.extui %0 : i1 to i32
    %c0_i32_0 = arith.constant 0 : i32
    %2 = arith.cmpi ne, %1, %c0_i32_0 : i32
    scf.if %2 {
      %c0_8 = arith.constant 0 : index
      %c0_9 = arith.constant 0 : index
      %11 = vector.load %arg3[%c0_8, %c0_9] : memref<64x128xi8, #tpu.memory_space<vmem>>, vector<64x128xi8>
      %12 = arith.sitofp %11 : vector<64x128xi8> to vector<64x128xf32>
      %13 = vector.shape_cast %12 : vector<64x128xf32> to vector<2x32x128xf32>
      %c0_10 = arith.constant 0 : index
      %c0_11 = arith.constant 0 : index
      %14 = vector.load %arg4[%c0_10, %c0_11] : memref<2x128xf32, #tpu.memory_space<vmem>>, vector<2x128xf32>
      %15 = vector.shape_cast %14 : vector<2x128xf32> to vector<2x1x128xf32>
      %c0_12 = arith.constant 0 : index
      %c0_13 = arith.constant 0 : index
      %16 = vector.load %arg5[%c0_12, %c0_13] : memref<2x128xf32, #tpu.memory_space<vmem>>, vector<2x128xf32>
      %17 = vector.shape_cast %16 : vector<2x128xf32> to vector<2x1x128xf32>
      %18 = vector.broadcast %17 : vector<2x1x128xf32> to vector<2x32x128xf32>
      %19 = arith.subf %13, %18 : vector<2x32x128xf32>
      %20 = vector.broadcast %15 : vector<2x1x128xf32> to vector<2x32x128xf32>
      %21 = arith.mulf %19, %20 : vector<2x32x128xf32>
      %22 = vector.shape_cast %21 : vector<2x32x128xf32> to vector<64x128xf32>
      %23 = arith.truncf %22 : vector<64x128xf32> to vector<64x128xbf16>
      %c0_14 = arith.constant 0 : index
      %c0_15 = arith.constant 0 : index
      %24 = vector.load %arg8[%c0_14, %c0_15] : memref<64x128xbf16, #tpu.memory_space<vmem>>, vector<64x128xbf16>
      tpu.vector_store %arg8[%c0_14, %c0_15], %23 {strides = array<i32>} : memref<64x128xbf16, #tpu.memory_space<vmem>>, vector<64x128xbf16>,
    } else {
    }
    %c0 = arith.constant 0 : index
    %c0_1 = arith.constant 0 : index
    %3 = vector.load %arg2[%c0, %c0_1] : memref<16x64xf32, #tpu.memory_space<vmem>>, vector<16x64xf32>
    %4 = arith.truncf %3 : vector<16x64xf32> to vector<16x64xbf16>
    %c0_2 = arith.constant 0 : index
    %c0_3 = arith.constant 0 : index
    %5 = vector.load %arg8[%c0_2, %c0_3] : memref<64x128xbf16, #tpu.memory_space<vmem>>, vector<64x128xbf16>
    %cst = arith.constant dense<0.000000e+00> : vector<16x128xf32>
    %6 = tpu.matmul %4, %5, %cst {dimension_numbers = #tpu.dot_dimension_numbers<[1], [0], [0], [1], [0, 0, 1, 1], [], []>} : vector<16x64xbf16>, vector<64x128xbf16>, vector<16x128xf32> -> vector<16x128xf32>
    %c0_4 = arith.constant 0 : index
    %c0_5 = arith.constant 0 : index
    %7 = vector.load %arg6[%c0_4, %c0_5] : memref<1x128xf32, #tpu.memory_space<vmem>>, vector<1x128xf32>
    %8 = vector.broadcast %7 : vector<1x128xf32> to vector<16x128xf32>
    %9 = arith.addf %6, %8 : vector<16x128xf32>
    %c0_6 = arith.constant 0 : index
    %c0_7 = arith.constant 0 : index
    %10 = vector.load %arg7[%c0_6, %c0_7] : memref<16x128xf32, #tpu.memory_space<vmem>>, vector<16x128xf32>
    tpu.vector_store %arg7[%c0_6, %c0_7], %9 {strides = array<i32>} : memref<16x128xf32, #tpu.memory_space<vmem>>, vector<16x128xf32>,
    return
  }
  func.func @transform_0(%arg0: i32, %arg1: i32) -> (i32, i32) {
    %c0_i32 = arith.constant 0 : i32
    %c0_i32_0 = arith.constant 0 : i32
    return %arg1, %c0_i32 : i32, i32
  }
  func.func @transform_1(%arg0: i32, %arg1: i32) -> (i32, i32) {
    %c0_i32 = arith.constant 0 : i32
    %c0_i32_0 = arith.constant 0 : i32
    return %c0_i32, %arg0 : i32, i32
  }
  func.func @transform_2(%arg0: i32, %arg1: i32) -> (i32, i32) {
    %c0_i32 = arith.constant 0 : i32
    %c0_i32_0 = arith.constant 0 : i32
    return %c0_i32, %arg0 : i32, i32
  }
  func.func @transform_3(%arg0: i32, %arg1: i32) -> (i32, i32) {
    %c0_i32 = arith.constant 0 : i32
    %c0_i32_0 = arith.constant 0 : i32
    return %c0_i32, %arg0 : i32, i32
  }
  func.func @transform_4(%arg0: i32, %arg1: i32) -> (i32, i32) {
    %c0_i32 = arith.constant 0 : i32
    %c0_i32_0 = arith.constant 0 : i32
    return %c0_i32, %arg0 : i32, i32
  }
  func.func @transform_5(%arg0: i32, %arg1: i32) -> (i32, i32) {
    %c0_i32 = arith.constant 0 : i32
    return %arg1, %arg0 : i32, i32
  }
}

module attributes {stable_mosaic.version = 11 : i64} {
  func.func @_quantized_linear_kernel(%arg0: i32, %arg1: i32, %arg2: memref<16x64xf32, #tpu.memory_space<vmem>>, %arg3: memref<64x128xi8, #tpu.memory_space<vmem>>, %arg4: memref<2x128xf32, #tpu.memory_space<vmem>>, %arg5: memref<2x128xf32, #tpu.memory_space<vmem>>, %arg6: memref<1x128xf32, #tpu.memory_space<vmem>>, %arg7: memref<16x128xf32, #tpu.memory_space<vmem>>, %arg8: memref<64x128xbf16, #tpu.memory_space<vmem>>) attributes {dimension_semantics = [#tpu.dimension_semantics<parallel>, #tpu.dimension_semantics<arbitrary>], iteration_bounds = array<i64: 1, 1>, scalar_prefetch = 0 : i64, scratch_operands = 1 : i64, tpu.core_type = #tpu.core_type<tc>, window_params = [{transform_indices = @transform_0, window_bounds = array<i64: 16, 64>}, {transform_indices = @transform_1, window_bounds = array<i64: 64, 128>}, {transform_indices = @transform_2, window_bounds = array<i64: 2, 128>}, {transform_indices = @transform_3, window_bounds = array<i64: 2, 128>}, {transform_indices = @transform_4, window_bounds = array<i64: 1, 128>}, {transform_indices = @transform_5, window_bounds = array<i64: 16, 128>}]} {
    %c0_i32 = arith.constant 0 : i32
    %0 = arith.cmpi eq, %arg1, %c0_i32 : i32
    %1 = arith.extui %0 : i1 to i32
    %c0_i32_0 = arith.constant 0 : i32
    %2 = arith.cmpi ne, %1, %c0_i32_0 : i32
    scf.if %2 {
      %c0_8 = arith.constant 0 : index
      %c0_9 = arith.constant 0 : index
      %11 = vector.load %arg3[%c0_8, %c0_9] : memref<64x128xi8, #tpu.memory_space<vmem>>, vector<64x128xi8>
      %12 = arith.sitofp %11 : vector<64x128xi8> to vector<64x128xf32>
      %13 = vector.shape_cast %12 : vector<64x128xf32> to vector<2x32x128xf32>
      %c0_10 = arith.constant 0 : index
      %c0_11 = arith.constant 0 : index
      %14 = vector.load %arg4[%c0_10, %c0_11] : memref<2x128xf32, #tpu.memory_space<vmem>>, vector<2x128xf32>
      %15 = vector.shape_cast %14 : vector<2x128xf32> to vector<2x1x128xf32>
      %c0_12 = arith.constant 0 : index
      %c0_13 = arith.constant 0 : index
      %16 = vector.load %arg5[%c0_12, %c0_13] : memref<2x128xf32, #tpu.memory_space<vmem>>, vector<2x128xf32>
      %17 = vector.shape_cast %16 : vector<2x128xf32> to vector<2x1x128xf32>
      %18 = vector.broadcast %17 : vector<2x1x128xf32> to vector<2x32x128xf32>
      %19 = arith.subf %13, %18 : vector<2x32x128xf32>
      %20 = vector.broadcast %15 : vector<2x1x128xf32> to vector<2x32x128xf32>
      %21 = arith.mulf %19, %20 : vector<2x32x128xf32>
      %22 = vector.shape_cast %21 : vector<2x32x128xf32> to vector<64x128xf32>
      %23 = arith.truncf %22 : vector<64x128xf32> to vector<64x128xbf16>
      %c0_14 = arith.constant 0 : index
      %c0_15 = arith.constant 0 : index
      %24 = vector.load %arg8[%c0_14, %c0_15] : memref<64x128xbf16, #tpu.memory_space<vmem>>, vector<64x128xbf16>
      tpu.vector_store %arg8[%c0_14, %c0_15], %23 {strides = array<i32>} : memref<64x128xbf16, #tpu.memory_space<vmem>>, vector<64x128xbf16>,
    } else {
    }
    %c0 = arith.constant 0 : index
    %c0_1 = arith.constant 0 : index
    %3 = vector.load %arg2[%c0, %c0_1] : memref<16x64xf32, #tpu.memory_space<vmem>>, vector<16x64xf32>
    %4 = arith.truncf %3 : vector<16x64xf32> to vector<16x64xbf16>
    %c0_2 = arith.constant 0 : index
    %c0_3 = arith.constant 0 : index
    %5 = vector.load %arg8[%c0_2, %c0_3] : memref<64x128xbf16, #tpu.memory_space<vmem>>, vector<64x128xbf16>
    %cst = arith.constant dense<0.000000e+00> : vector<16x128xf32>
    %6 = tpu.matmul %4, %5, %cst {dimension_numbers = #tpu.dot_dimension_numbers<[1], [0], [0], [1], [0, 0, 1, 1], [], []>} : vector<16x64xbf16>, vector<64x128xbf16>, vector<16x128xf32> -> vector<16x128xf32>
    %c0_4 = arith.constant 0 : index
    %c0_5 = arith.constant 0 : index
    %7 = vector.load %arg6[%c0_4, %c0_5] : memref<1x128xf32, #tpu.memory_space<vmem>>, vector<1x128xf32>
    %8 = vector.broadcast %7 : vector<1x128xf32> to vector<16x128xf32>
    %9 = arith.addf %6, %8 : vector<16x128xf32>
    %c0_6 = arith.constant 0 : index
    %c0_7 = arith.constant 0 : index
    %10 = vector.load %arg7[%c0_6, %c0_7] : memref<16x128xf32, #tpu.memory_space<vmem>>, vector<16x128xf32>
    tpu.vector_store %arg7[%c0_6, %c0_7], %9 {strides = array<i32>} : memref<16x128xf32, #tpu.memory_space<vmem>>, vector<16x128xf32>,
    return
  }
  func.func @transform_0(%arg0: i32, %arg1: i32) -> (i32, i32) {
    %c0_i32 = arith.constant 0 : i32
    %c0_i32_0 = arith.constant 0 : i32
    return %arg1, %c0_i32 : i32, i32
  }
  func.func @transform_1(%arg0: i32, %arg1: i32) -> (i32, i32) {
    %c0_i32 = arith.constant 0 : i32
    %c0_i32_0 = arith.constant 0 : i32
    return %c0_i32, %arg0 : i32, i32
  }
  func.func @transform_2(%arg0: i32, %arg1: i32) -> (i32, i32) {
    %c0_i32 = arith.constant 0 : i32
    %c0_i32_0 = arith.constant 0 : i32
    return %c0_i32, %arg0 : i32, i32
  }
  func.func @transform_3(%arg0: i32, %arg1: i32) -> (i32, i32) {
    %c0_i32 = arith.constant 0 : i32
    %c0_i32_0 = arith.constant 0 : i32
    return %c0_i32, %arg0 : i32, i32
  }
  func.func @transform_4(%arg0: i32, %arg1: i32) -> (i32, i32) {
    %c0_i32 = arith.constant 0 : i32
    %c0_i32_0 = arith.constant 0 : i32
    return %c0_i32, %arg0 : i32, i32
  }
  func.func @transform_5(%arg0: i32, %arg1: i32) -> (i32, i32) {
    %c0_i32 = arith.constant 0 : i32
    return %arg1, %arg0 : i32, i32
  }
}

</mosaic_0001>

<bundles_post_ra>
// kernel: tpu_custom_call.1
= control target key start
LH: loop header
LB: loop body
LE: loop exit
PB: predicated region body
PF: predicated region fallthrough
CT: control target
= control target key end

     0   :  { %10 = vsyncpa [#allocation4], 0  ;;  %s441_s0 = inlined_call_operand.hbm [shape: f32[16,64], index: 0, kind: input, shape index: {}]   ;;  %s442_s1 = inlined_call_operand.hbm [shape: s8[64,128], index: 1, kind: input, shape index: {}]   ;;  %s443_s2 = inlined_call_operand.vmem [shape: f32[2,128], index: 2, kind: input, shape index: {}]   ;;  %s444_s3 = inlined_call_operand.vmem [shape: f32[2,128], index: 3, kind: input, shape index: {}]   ;;  %s445_s4 = inlined_call_operand.vmem [shape: f32[1,128], index: 4, kind: input, shape index: {}]   ;;  %s446_s5 = inlined_call_operand.hbm [shape: f32[16,128], index: 5, kind: output, shape index: {}]  }
   0x1   :  { %11 = vsyncpa [#allocation7], 0 }
   0x2   :  { %12 = vsyncpa [#allocation5], 0  ;;  %s344_s18 = smov [#allocation3]   ;;  %s272_s22 = scalar_lea.hbm %s441_s0, 256 }
   0x3   :  { %s18_s19 = sshll.u32 %s344_s18, 4  ;;  %p273_p0 = scmp.ne.s32.totalorder %s441_s0, %s272_s22  ;;  %s19_s19 = int_to_ptr.vmem [resolvable:$true] %s18_s19 }
   0x4   :  { %p276_p1 = scmp.lt.u32.totalorder %s272_s22, %s441_s0 }
   0x6   :  { %p278_p2 = pnand %p276_p1, %p273_p0 }
   0x8   :  { %281 = shalt.err (!%p278_p2)
}
   0x9   :  { %s282_s27 = scalar_lea.vmem %s19_s19, 256  ;;  %p287_p4 = scmp.lt.s32.totalorder %s19_s19, %s19_s19 }
   0xa   :  { %p283_p3 = scmp.ne.s32.totalorder %s19_s19, %s282_s27  ;;  %p288_p5 = scmp.lt.s32.totalorder %s282_s27, %s282_s27 }
   0xc   :  { %p289_p6 = por %p288_p5, %p287_p4 }
   0xe   :  { %p290_p7 = pnand %p289_p6, %p283_p3 }
  0x10   :  { %293 = shalt.err (!%p290_p7)
}
  0x11   :  { %s345_s28 = smov 128   ;;  %s346_s29 = smov 8  }
  0x12   :  { %24 = dma.hbm_to_vmem [thread:$0]  %s441_s0, 256, %s19_s19, [#allocation4], %s345_s28, %s345_s28, %s346_s29  }
  0x13   :  { %s347_s7 = smov [#allocation6]   ;;  %s294_s11 = scalar_lea.hbm %s442_s1, 256 }
  0x14   :  { %s30_s8 = sshll.u32 %s347_s7, 4  ;;  %p295_p8 = scmp.ne.s32.totalorder %s442_s1, %s294_s11  ;;  %s31_s8 = int_to_ptr.vmem [resolvable:$true] %s30_s8 }
  0x15   :  { %p298_p9 = scmp.lt.u32.totalorder %s294_s11, %s442_s1 }
  0x17   :  { %p300_p10 = pnand %p298_p9, %p295_p8 }
  0x19   :  { %303 = shalt.err (!%p300_p10)
}
  0x1a   :  { %s304_s16 = scalar_lea.vmem %s31_s8, 256  ;;  %p309_p12 = scmp.lt.s32.totalorder %s31_s8, %s31_s8 }
  0x1b   :  { %p305_p11 = scmp.ne.s32.totalorder %s31_s8, %s304_s16  ;;  %p310_p13 = scmp.lt.s32.totalorder %s304_s16, %s304_s16 }
  0x1d   :  { %p311_p0 = por %p310_p13, %p309_p12 }
  0x1f   :  { %p312_p1 = pnand %p311_p0, %p305_p11 }
  0x21   :  { %315 = shalt.err (!%p312_p1)
}
  0x22   :  { %36 = dma.hbm_to_vmem [thread:$0]  %s442_s1, 256, %s31_s8, [#allocation7], %s345_s28, %s345_s28, %s346_s29  }
  0x23   :  { %338 = dma.done.wait [#allocation4], 256  }
  0x24   :  { %339 = vsyncadd [#allocation4], 4294967040 }
  0x25   :  { %340 = dma.done.wait [#allocation7], 256  }
  0x26   :  { %341 = vsyncadd [#allocation7], 4294967040  ;;  %v85_v0 = vlaneseq  ;;  %v348_v1 = vmov 0.0   ;;  %v349_v2 = vmov 1966171168   ;;  %vm350_vm0 = vmmov 0  }
  0x27   :  { %252 = vmatprep.subr.bf16.mxu0 %v348_v1  ;;  %v83_v3 = vunpack.c.l.s4 %v349_v2  ;;  %260 = vmatprep.mubr.msk.bf16.mxu0 %vm350_vm0, %v348_v1  ;;  %v54_v8 = vld [vmem:[#allocation6] sm:$0xff]  ;;  %v243_v9 = vld.sshfl [vmem:[%s443_s2] sm:$0x11 pattern:$0x75316420]  ;;  %v55_v10 = vld [vmem:[#allocation6 + $0x8] sm:$0xff] }
  0x28   :  { %v86_v4 = vshrl.u32 %v85_v0, 7  ;;  %v56_v11 = vunpack.c.0.s8 %v54_v8  ;;  %v57_v12 = vunpack.c.1.s8 %v54_v8  ;;  %v81_v13 = vcombine.high %v243_v9, %v243_v9  ;;  %v244_v15 = vld.sshfl [vmem:[%s444_s3] sm:$0x11 pattern:$0x75316420]  ;;  %v165_v59 = vld [vmem:[#allocation3 + $0x8] sm:$0xff] }
  0x29   :  { %v84_v5 = vunpack.c.0.s8 %v83_v3  ;;  %v105_v16 = vcombine.high %v244_v15, %v244_v15  ;;  %v58_v18 = vunpack.c.2.s8 %v54_v8  ;;  %v59_v19 = vunpack.c.3.s8 %v54_v8  ;;  %v164_v58 = vld [vmem:[#allocation3] sm:$0xff]  ;;  %s351_s21 = smov [#allocation8]  }
  0x2a   :  { %v122_v7 = vsub.s32 0, %v86_v4  ;;  %v64_v20 = vcvt.s32.f32 %v56_v11  ;;  %v65_v21 = vcvt.s32.f32 %v57_v12  ;;  %v60_v23 = vunpack.c.0.s8 %v55_v10  ;;  %v245_v61 = vld [vmem:[%s445_s4] ss:$0 sm:$0xff]  ;;  %s230_s22 = sshll.u32 %s351_s21, 4  ;;  %s231_s22 = int_to_ptr.vmem [resolvable:$true] %s230_s22 }
  0x2b   :  { %v87_v6 = vsub.s32 %v84_v5, %v86_v4  ;;  %v66_v25 = vcvt.s32.f32 %v58_v18  ;;  %v67_v26 = vcvt.s32.f32 %v59_v19  ;;  %v61_v27 = vunpack.c.1.s8 %v55_v10  ;;  %s316_s23 = scalar_lea.vmem %s231_s22, 256  ;;  %p321_p3 = scmp.lt.s32.totalorder %s231_s22, %s231_s22 }
  0x2c   :  { %v68_v28 = vcvt.s32.f32 %v60_v23  ;;  %v62_v31 = vunpack.c.2.s8 %v55_v10  ;;  %v63_v39 = vunpack.c.3.s8 %v55_v10  ;;  %v166_v60 = vpack.c.bf16 %v165_v59, %v164_v58  ;;  %p317_p2 = scmp.ne.s32.totalorder %s231_s22, %s316_s23  ;;  %p322_p4 = scmp.lt.s32.totalorder %s316_s23, %s316_s23 }
  0x2d   :  { %v88_v14 = vrot.slane %v243_v9, %v87_v6  ;;  %v112_v17 = vrot.slane %v244_v15, %v87_v6  ;;  %v95_v29 = vrot.slane %v81_v13, %v87_v6  ;;  %v119_v30 = vrot.slane %v105_v16, %v87_v6 }
  0x2e   :  { %v69_v36 = vcvt.s32.f32 %v61_v27  ;;  %v70_v46 = vcvt.s32.f32 %v62_v31  ;;  %v71_v47 = vcvt.s32.f32 %v63_v39  ;;  %vm178_vm1 = vcmask 523264   ;;  %p323_p5 = por %p322_p4, %p321_p3 }
  0x2f   :  { %v141_v22 = vrot.slane %v88_v14, %v122_v7  ;;  %v123_v24 = vrot.slane %v112_v17, %v122_v7  ;;  %v127_v37 = vrot.slane %v119_v30, %v122_v7  ;;  %v145_v38 = vrot.slane %v95_v29, %v122_v7 }
  0x30   :  { %p324_p6 = pnand %p323_p5, %p317_p2 }
  0x31   :  { %v130_v32 = vsub.f32 %v64_v20, %v123_v24  ;;  %v131_v33 = vsub.f32 %v65_v21, %v123_v24  ;;  %v132_v34 = vsub.f32 %v66_v25, %v123_v24  ;;  %v133_v35 = vsub.f32 %v67_v26, %v123_v24 }
  0x32   :  { %v134_v44 = vsub.f32 %v68_v28, %v127_v37  ;;  %v135_v45 = vsub.f32 %v69_v36, %v127_v37  ;;  %v136_v52 = vsub.f32 %v70_v46, %v127_v37  ;;  %v137_v53 = vsub.f32 %v71_v47, %v127_v37 }
  0x33   :  { %v148_v40 = vmul.f32 %v141_v22, %v130_v32  ;;  %v149_v41 = vmul.f32 %v141_v22, %v131_v33  ;;  %v150_v42 = vmul.f32 %v141_v22, %v132_v34  ;;  %v151_v43 = vmul.f32 %v141_v22, %v133_v35 }
  0x34   :  { %v152_v50 = vmul.f32 %v145_v38, %v134_v44  ;;  %v153_v51 = vmul.f32 %v145_v38, %v135_v45  ;;  %v154_v55 = vmul.f32 %v145_v38, %v136_v52  ;;  %v155_v56 = vmul.f32 %v145_v38, %v137_v53 }
  0x35   :  { %v156_v48 = vpack.c.bf16 %v149_v41, %v148_v40  ;;  %v157_v49 = vpack.c.bf16 %v151_v43, %v150_v42 }
  0x36   :  { %v158_v54 = vpack.c.bf16 %v153_v51, %v152_v50  ;;  %v159_v57 = vpack.c.bf16 %v155_v56, %v154_v55 }
  0x37   :  { %253 = vmatpush3.bf16.msra.mxu0 %v156_v48 }
  0x38   :  { %254 = vmatprep.subr.bf16.mxu0 %v348_v1 }
  0x3b   :  { %255 = vmatpush3.bf16.msra.mxu0 %v157_v49 }
  0x3c   :  { %256 = vmatprep.subr.bf16.mxu0 %v348_v1 }
  0x3f   :  { %257 = vmatpush3.bf16.msra.mxu0 %v158_v54 }
  0x40   :  { %258 = vmatprep.subr.bf16.mxu0 %v348_v1 }
  0x43   :  { %259 = vmatpush3.bf16.msra.mxu0 %v159_v57 }
  0x46   :  { %261 = vmatmul.mubr.msk.bf16.vlgmr.msra.gmra.mrb[0].mxu0 %vm178_vm1, %v166_v60 }
 0x119   :  { %v216_v62 = vpop.f32.mrb[0].mxu0 }
 0x11a   :  { %v217_v63 = vadd.f32 %v245_v61, %v216_v62  ;;  %v262_v0 = vpop.f32.mrb[1].mxu0 }
 0x11b   :  { %v219_v2 = vpop.f32.mrb[2].mxu0 }
 0x11c   :  { %223 = vst [vmem:[#allocation8] sm:$0xff] %v217_v63  ;;  %v220_v3 = vadd.f32 %v245_v61, %v219_v2  ;;  %v263_v4 = vpop.f32.mrb[3].mxu0 }
 0x11e   :  { %224 = vst [vmem:[#allocation8 + $0x8] sm:$0xff] %v220_v3 }
 0x11f   :  { %327 = shalt.err (!%p324_p6)
}
 0x120   :  { %s328_s25 = scalar_lea.hbm %s446_s5, 256 }
 0x121   :  { %p329_p7 = scmp.ne.s32.totalorder %s446_s5, %s328_s25  ;;  %p332_p8 = scmp.lt.u32.totalorder %s328_s25, %s446_s5 }
 0x123   :  { %p334_p9 = pnand %p332_p8, %p329_p7 }
 0x125   :  { %337 = shalt.err (!%p334_p9)
}
 0x126   :  { %236 = dma.vmem_to_hbm [thread:$0]  %s231_s22, 256, %s446_s5, [#allocation5], %s345_s28, %s345_s28, %s346_s29  }
 0x127   :  { %342 = dma.done.wait [#allocation5], 256  }
 0x128   :  { %343 = vsyncadd [#allocation5], 4294967040 }
 0x129   :  { %240 = vsyncpa [#allocation4], 1 }
 0x12a   :  { %241 = vsyncpa [#allocation7], 1 }
 0x12b   :  { %242 = vsyncpa [#allocation5], 1 }

// kernel: tpu_custom_call.1
= control target key start
LH: loop header
LB: loop body
LE: loop exit
PB: predicated region body
PF: predicated region fallthrough
CT: control target
= control target key end

     0   :  { %10 = vsyncpa [#allocation4], 0  ;;  %s441_s0 = inlined_call_operand.hbm [shape: f32[16,64], index: 0, kind: input, shape index: {}]   ;;  %s442_s1 = inlined_call_operand.hbm [shape: s8[64,128], index: 1, kind: input, shape index: {}]   ;;  %s443_s2 = inlined_call_operand.vmem [shape: f32[2,128], index: 2, kind: input, shape index: {}]   ;;  %s444_s3 = inlined_call_operand.vmem [shape: f32[2,128], index: 3, kind: input, shape index: {}]   ;;  %s445_s4 = inlined_call_operand.vmem [shape: f32[1,128], index: 4, kind: input, shape index: {}]   ;;  %s446_s5 = inlined_call_operand.hbm [shape: f32[16,128], index: 5, kind: output, shape index: {}]  }
   0x1   :  { %11 = vsyncpa [#allocation7], 0 }
   0x2   :  { %12 = vsyncpa [#allocation5], 0  ;;  %s344_s18 = smov [#allocation3]   ;;  %s272_s22 = scalar_lea.hbm %s441_s0, 256 }
   0x3   :  { %s18_s19 = sshll.u32 %s344_s18, 4  ;;  %p273_p0 = scmp.ne.s32.totalorder %s441_s0, %s272_s22  ;;  %s19_s19 = int_to_ptr.vmem [resolvable:$true] %s18_s19 }
   0x4   :  { %p276_p1 = scmp.lt.u32.totalorder %s272_s22, %s441_s0 }
   0x6   :  { %p278_p2 = pnand %p276_p1, %p273_p0 }
   0x8   :  { %281 = shalt.err (!%p278_p2)
}
   0x9   :  { %s282_s27 = scalar_lea.vmem %s19_s19, 256  ;;  %p287_p4 = scmp.lt.s32.totalorder %s19_s19, %s19_s19 }
   0xa   :  { %p283_p3 = scmp.ne.s32.totalorder %s19_s19, %s282_s27  ;;  %p288_p5 = scmp.lt.s32.totalorder %s282_s27, %s282_s27 }
   0xc   :  { %p289_p6 = por %p288_p5, %p287_p4 }
   0xe   :  { %p290_p7 = pnand %p289_p6, %p283_p3 }
  0x10   :  { %293 = shalt.err (!%p290_p7)
}
  0x11   :  { %s345_s28 = smov 128   ;;  %s346_s29 = smov 8  }
  0x12   :  { %24 = dma.hbm_to_vmem [thread:$0]  %s441_s0, 256, %s19_s19, [#allocation4], %s345_s28, %s345_s28, %s346_s29  }
  0x13   :  { %s347_s7 = smov [#allocation6]   ;;  %s294_s11 = scalar_lea.hbm %s442_s1, 256 }
  0x14   :  { %s30_s8 = sshll.u32 %s347_s7, 4  ;;  %p295_p8 = scmp.ne.s32.totalorder %s442_s1, %s294_s11  ;;  %s31_s8 = int_to_ptr.vmem [resolvable:$true] %s30_s8 }
  0x15   :  { %p298_p9 = scmp.lt.u32.totalorder %s294_s11, %s442_s1 }
  0x17   :  { %p300_p10 = pnand %p298_p9, %p295_p8 }
  0x19   :  { %303 = shalt.err (!%p300_p10)
}
  0x1a   :  { %s304_s16 = scalar_lea.vmem %s31_s8, 256  ;;  %p309_p12 = scmp.lt.s32.totalorder %s31_s8, %s31_s8 }
  0x1b   :  { %p305_p11 = scmp.ne.s32.totalorder %s31_s8, %s304_s16  ;;  %p310_p13 = scmp.lt.s32.totalorder %s304_s16, %s304_s16 }
  0x1d   :  { %p311_p0 = por %p310_p13, %p309_p12 }
  0x1f   :  { %p312_p1 = pnand %p311_p0, %p305_p11 }
  0x21   :  { %315 = shalt.err (!%p312_p1)
}
  0x22   :  { %36 = dma.hbm_to_vmem [thread:$0]  %s442_s1, 256, %s31_s8, [#allocation7], %s345_s28, %s345_s28, %s346_s29  }
  0x23   :  { %338 = dma.done.wait [#allocation4], 256  }
  0x24   :  { %339 = vsyncadd [#allocation4], 4294967040 }
  0x25   :  { %340 = dma.done.wait [#allocation7], 256  }
  0x26   :  { %341 = vsyncadd [#allocation7], 4294967040  ;;  %v85_v0 = vlaneseq  ;;  %v348_v1 = vmov 0.0   ;;  %v349_v2 = vmov 1966171168   ;;  %vm350_vm0 = vmmov 0  }
  0x27   :  { %252 = vmatprep.subr.bf16.mxu0 %v348_v1  ;;  %v83_v3 = vunpack.c.l.s4 %v349_v2  ;;  %260 = vmatprep.mubr.msk.bf16.mxu0 %vm350_vm0, %v348_v1  ;;  %v54_v8 = vld [vmem:[#allocation6] sm:$0xff]  ;;  %v243_v9 = vld.sshfl [vmem:[%s443_s2] sm:$0x11 pattern:$0x75316420]  ;;  %v55_v10 = vld [vmem:[#allocation6 + $0x8] sm:$0xff] }
  0x28   :  { %v86_v4 = vshrl.u32 %v85_v0, 7  ;;  %v56_v11 = vunpack.c.0.s8 %v54_v8  ;;  %v57_v12 = vunpack.c.1.s8 %v54_v8  ;;  %v81_v13 = vcombine.high %v243_v9, %v243_v9  ;;  %v244_v15 = vld.sshfl [vmem:[%s444_s3] sm:$0x11 pattern:$0x75316420]  ;;  %v165_v59 = vld [vmem:[#allocation3 + $0x8] sm:$0xff] }
  0x29   :  { %v84_v5 = vunpack.c.0.s8 %v83_v3  ;;  %v105_v16 = vcombine.high %v244_v15, %v244_v15  ;;  %v58_v18 = vunpack.c.2.s8 %v54_v8  ;;  %v59_v19 = vunpack.c.3.s8 %v54_v8  ;;  %v164_v58 = vld [vmem:[#allocation3] sm:$0xff]  ;;  %s351_s21 = smov [#allocation8]  }
  0x2a   :  { %v122_v7 = vsub.s32 0, %v86_v4  ;;  %v64_v20 = vcvt.s32.f32 %v56_v11  ;;  %v65_v21 = vcvt.s32.f32 %v57_v12  ;;  %v60_v23 = vunpack.c.0.s8 %v55_v10  ;;  %v245_v61 = vld [vmem:[%s445_s4] ss:$0 sm:$0xff]  ;;  %s230_s22 = sshll.u32 %s351_s21, 4  ;;  %s231_s22 = int_to_ptr.vmem [resolvable:$true] %s230_s22 }
  0x2b   :  { %v87_v6 = vsub.s32 %v84_v5, %v86_v4  ;;  %v66_v25 = vcvt.s32.f32 %v58_v18  ;;  %v67_v26 = vcvt.s32.f32 %v59_v19  ;;  %v61_v27 = vunpack.c.1.s8 %v55_v10  ;;  %s316_s23 = scalar_lea.vmem %s231_s22, 256  ;;  %p321_p3 = scmp.lt.s32.totalorder %s231_s22, %s231_s22 }
  0x2c   :  { %v68_v28 = vcvt.s32.f32 %v60_v23  ;;  %v62_v31 = vunpack.c.2.s8 %v55_v10  ;;  %v63_v39 = vunpack.c.3.s8 %v55_v10  ;;  %v166_v60 = vpack.c.bf16 %v165_v59, %v164_v58  ;;  %p317_p2 = scmp.ne.s32.totalorder %s231_s22, %s316_s23  ;;  %p322_p4 = scmp.lt.s32.totalorder %s316_s23, %s316_s23 }
  0x2d   :  { %v88_v14 = vrot.slane %v243_v9, %v87_v6  ;;  %v112_v17 = vrot.slane %v244_v15, %v87_v6  ;;  %v95_v29 = vrot.slane %v81_v13, %v87_v6  ;;  %v119_v30 = vrot.slane %v105_v16, %v87_v6 }
  0x2e   :  { %v69_v36 = vcvt.s32.f32 %v61_v27  ;;  %v70_v46 = vcvt.s32.f32 %v62_v31  ;;  %v71_v47 = vcvt.s32.f32 %v63_v39  ;;  %vm178_vm1 = vcmask 523264   ;;  %p323_p5 = por %p322_p4, %p321_p3 }
  0x2f   :  { %v141_v22 = vrot.slane %v88_v14, %v122_v7  ;;  %v123_v24 = vrot.slane %v112_v17, %v122_v7  ;;  %v127_v37 = vrot.slane %v119_v30, %v122_v7  ;;  %v145_v38 = vrot.slane %v95_v29, %v122_v7 }
  0x30   :  { %p324_p6 = pnand %p323_p5, %p317_p2 }
  0x31   :  { %v130_v32 = vsub.f32 %v64_v20, %v123_v24  ;;  %v131_v33 = vsub.f32 %v65_v21, %v123_v24  ;;  %v132_v34 = vsub.f32 %v66_v25, %v123_v24  ;;  %v133_v35 = vsub.f32 %v67_v26, %v123_v24 }
  0x32   :  { %v134_v44 = vsub.f32 %v68_v28, %v127_v37  ;;  %v135_v45 = vsub.f32 %v69_v36, %v127_v37  ;;  %v136_v52 = vsub.f32 %v70_v46, %v127_v37  ;;  %v137_v53 = vsub.f32 %v71_v47, %v127_v37 }
  0x33   :  { %v148_v40 = vmul.f32 %v141_v22, %v130_v32  ;;  %v149_v41 = vmul.f32 %v141_v22, %v131_v33  ;;  %v150_v42 = vmul.f32 %v141_v22, %v132_v34  ;;  %v151_v43 = vmul.f32 %v141_v22, %v133_v35 }
  0x34   :  { %v152_v50 = vmul.f32 %v145_v38, %v134_v44  ;;  %v153_v51 = vmul.f32 %v145_v38, %v135_v45  ;;  %v154_v55 = vmul.f32 %v145_v38, %v136_v52  ;;  %v155_v56 = vmul.f32 %v145_v38, %v137_v53 }
  0x35   :  { %v156_v48 = vpack.c.bf16 %v149_v41, %v148_v40  ;;  %v157_v49 = vpack.c.bf16 %v151_v43, %v150_v42 }
  0x36   :  { %v158_v54 = vpack.c.bf16 %v153_v51, %v152_v50  ;;  %v159_v57 = vpack.c.bf16 %v155_v56, %v154_v55 }
  0x37   :  { %253 = vmatpush3.bf16.msra.mxu0 %v156_v48 }
  0x38   :  { %254 = vmatprep.subr.bf16.mxu0 %v348_v1 }
  0x3b   :  { %255 = vmatpush3.bf16.msra.mxu0 %v157_v49 }
  0x3c   :  { %256 = vmatprep.subr.bf16.mxu0 %v348_v1 }
  0x3f   :  { %257 = vmatpush3.bf16.msra.mxu0 %v158_v54 }
  0x40   :  { %258 = vmatprep.subr.bf16.mxu0 %v348_v1 }
  0x43   :  { %259 = vmatpush3.bf16.msra.mxu0 %v159_v57 }
  0x46   :  { %261 = vmatmul.mubr.msk.bf16.vlgmr.msra.gmra.mrb[0].mxu0 %vm178_vm1, %v166_v60 }
 0x119   :  { %v216_v62 = vpop.f32.mrb[0].mxu0 }
 0x11a   :  { %v217_v63 = vadd.f32 %v245_v61, %v216_v62  ;;  %v262_v0 = vpop.f32.mrb[1].mxu0 }
 0x11b   :  { %v219_v2 = vpop.f32.mrb[2].mxu0 }
 0x11c   :  { %223 = vst [vmem:[#allocation8] sm:$0xff] %v217_v63  ;;  %v220_v3 = vadd.f32 %v245_v61, %v219_v2  ;;  %v263_v4 = vpop.f32.mrb[3].mxu0 }
 0x11e   :  { %224 = vst [vmem:[#allocation8 + $0x8] sm:$0xff] %v220_v3 }
 0x11f   :  { %327 = shalt.err (!%p324_p6)
}
 0x120   :  { %s328_s25 = scalar_lea.hbm %s446_s5, 256 }
 0x121   :  { %p329_p7 = scmp.ne.s32.totalorder %s446_s5, %s328_s25  ;;  %p332_p8 = scmp.lt.u32.totalorder %s328_s25, %s446_s5 }
 0x123   :  { %p334_p9 = pnand %p332_p8, %p329_p7 }
 0x125   :  { %337 = shalt.err (!%p334_p9)
}
 0x126   :  { %236 = dma.vmem_to_hbm [thread:$0]  %s231_s22, 256, %s446_s5, [#allocation5], %s345_s28, %s345_s28, %s346_s29  }
 0x127   :  { %342 = dma.done.wait [#allocation5], 256  }
 0x128   :  { %343 = vsyncadd [#allocation5], 4294967040 }
 0x129   :  { %240 = vsyncpa [#allocation4], 1 }
 0x12a   :  { %241 = vsyncpa [#allocation7], 1 }
 0x12b   :  { %242 = vsyncpa [#allocation5], 1 }

</bundles_post_ra>
